<compile_context>
chip_gen: v7x
topology: tpu7x:2x2x1
jax: 0.10.0
libtpu: 0.0.40
codegen_flags: <defaults>
</compile_context>

<pallas_src>
import functools
import math
import random

import jax
import jax.numpy as jnp
from jax.experimental import pallas as pl
from jax.experimental.pallas import tpu as pltpu

_LANE = 128      # lane width (last-dim granule for padded hidden dims)
_SUBLANE = 8     # sublane granule


def _round_up(x, m):
    return ((x + m - 1) // m) * m


def _cdiv(a, b):
    return -(-a // b)


# ----------------------------------------------------------------------------
# Activation functions (mirrors bpnn.get_activation_function)
# ----------------------------------------------------------------------------
def _activation(x, activation_func: int):
    if activation_func == 0:      # ReLU
        return jnp.maximum(x, 0.0)
    elif activation_func == 1:    # Tanh
        return jnp.tanh(x)
    elif activation_func == 2:    # Sigmoid
        return jax.nn.sigmoid(x)
    elif activation_func == 3:    # ELU
        return jnp.where(x > 0, x, jnp.expm1(x))
    elif activation_func == 4:    # LeakyReLU(0.01)
        return jnp.where(x > 0, x, 0.01 * x)
    elif activation_func == 5:    # GELU (exact erf, matches nn.GELU default)
        return jax.nn.gelu(x, approximate=False)
    elif activation_func == 6:    # Swish
        return x * jax.nn.sigmoid(x)
    else:
        raise ValueError(f"unknown activation_func={activation_func}")


# ----------------------------------------------------------------------------
# Pallas kernel: full fused MLP forward for one batch tile.
# Refs: x_tile, W0, b0, ..., W_{H-1}, b_{H-1}, w_last, b_last, out_tile
#   x_tile : bf16 (tb, in_p)
#   W_i    : bf16 (in_pad_i, out_pad_i)  zero-padded
#   b_i    : f32  (1, out_pad_i)         zero-padded
#   w_last : f32  (1, prev_pad)          final Linear(prev,1) weight row
#   b_last : f32  (1, 1)
#   out    : f32  (tb, 1)
# One MXU matmul per hidden layer (bf16 in, f32 accumulate); bias/activation
# on VPU/EUP in f32; final layer is a VPU multiply + XLU lane reduction.
# Parameters use constant block indices -> stay VMEM-resident across tiles.
# ----------------------------------------------------------------------------
def _bpnn_kernel(*refs, num_hidden: int, activation_func: int):
    x_ref = refs[0]
    out_ref = refs[-1]
    param_refs = refs[1:-1]

    h = x_ref[...]                                   # bf16 (tb, in_p)
    for layer in range(num_hidden):
        w = param_refs[2 * layer][...]               # bf16 (in_pad, out_pad)
        b = param_refs[2 * layer + 1][...]           # f32  (1, out_pad)
        z = jnp.dot(h.astype(jnp.bfloat16), w,
                    preferred_element_type=jnp.float32) + b
        h = _activation(z, activation_func)          # f32 (dropout = identity)

    w_last = param_refs[2 * num_hidden][...]         # f32 (1, prev_pad)
    b_last = param_refs[2 * num_hidden + 1][...]     # f32 (1, 1)
    hf = h.astype(jnp.float32)
    y = jnp.sum(hf * w_last, axis=-1, keepdims=True) + b_last   # (tb, 1)
    out_ref[...] = y.astype(out_ref.dtype)


# ----------------------------------------------------------------------------
# Batch tiling: multiple of 16, small tail padding, >=2 tiles when B is large
# enough (so v7x megacore can shard the "parallel" batch axis).
# ----------------------------------------------------------------------------
def _choose_batch_tiling(B, batch_tile):
    n_tiles = _cdiv(B, batch_tile)
    if n_tiles == 1 and B > 256:
        n_tiles = 2
    tb = _round_up(_cdiv(B, n_tiles), 16)
    b_pad = _round_up(B, tb)
    return tb, b_pad


# ----------------------------------------------------------------------------
# Wrapper: minimal bf16 pad of x, batch tiled over a parallel grid axis.
# ----------------------------------------------------------------------------
def bpnn_forward(x, padded_params, *, activation_func: int,
                 batch_tile: int = 1024):
    """x: (B, input_dim) float. padded_params: from build_bpnn_params."""
    B, in_dim = x.shape
    num_hidden = len(padded_params) - 1
    if num_hidden > 0:
        in_p = padded_params[0][0].shape[0]          # W0 rows
        prev_pad = padded_params[-1][0].shape[1]
    else:
        in_p = padded_params[0][0].shape[1]          # final row-vector width
        prev_pad = in_p
    del prev_pad  # (implied by param shapes; kept for clarity)

    tb, b_pad = _choose_batch_tiling(B, batch_tile)

    # Pad directly in bf16 (half the pad-op HBM traffic vs f32).
    # TODO(synk): for a hot loop, fuse this pad/cast into the data producer.
    x_bf = x.astype(jnp.bfloat16)
    if (b_pad, in_p) != (B, in_dim):
        x_bf = jnp.pad(x_bf, ((0, b_pad - B), (0, in_p - in_dim)))

    flat_params = []
    for w, b in padded_params:
        flat_params.append(w)
        flat_params.append(b)

    # x/out tiled along batch; params resident (constant block index).
    in_specs = [pl.BlockSpec((tb, in_p), lambda i: (i, 0))]
    for p in flat_params:
        in_specs.append(pl.BlockSpec(p.shape, lambda i: (0, 0)))
    out_specs = pl.BlockSpec((tb, 1), lambda i: (i, 0))

    kernel = functools.partial(
        _bpnn_kernel, num_hidden=num_hidden, activation_func=activation_func
    )

    out_padded = pl.pallas_call(
        kernel,
        out_shape=jax.ShapeDtypeStruct((b_pad, 1), jnp.float32),
        grid=(b_pad // tb,),
        in_specs=in_specs,
        out_specs=out_specs,
        compiler_params=pltpu.CompilerParams(
            dimension_semantics=("parallel",),   # v7x: shard batch tiles over TCs
        ),
    )(x_bf, *flat_params)

    return out_padded[:B, :]


# ----------------------------------------------------------------------------
# Deterministic parameter construction (mirrors bpnn.__init__) + padding.
# ----------------------------------------------------------------------------
def build_bpnn_params(key, input_dim, hidden_layers, hidden_units_range):
    rng = random.Random(0)  # deterministic stand-in for module's random.randint
    hidden_units_list = [
        rng.randint(hidden_units_range[0], hidden_units_range[1])
        for _ in range(hidden_layers)
    ]
    layer_dims = []
    prev = input_dim
    for h in hidden_units_list:
        layer_dims.append((prev, h))
        prev = h
    layer_dims.append((prev, 1))  # final Linear(prev, 1)

    params = []          # exact f32 params (reference)
    padded_params = []   # kernel params (bf16 hidden W, f32 biases / final)
    n = len(layer_dims)
    for idx, (fan_in, fan_out) in enumerate(layer_dims):
        key, kw, kb = jax.random.split(key, 3)
        bound = 1.0 / math.sqrt(fan_in)  # PyTorch default Linear init range
        w = jax.random.uniform(kw, (fan_in, fan_out), jnp.float32, -bound, bound)
        b = jax.random.uniform(kb, (1, fan_out), jnp.float32, -bound, bound)
        params.append((w, b))

        # Layer-0 input width is only padded to the sublane granule (the x
        # block's last dim equals the full array dim, so 128-padding is not
        # required); deeper layers' K equals the previous padded output (128x).
        in_p = _round_up(fan_in, _SUBLANE) if idx == 0 else _round_up(fan_in, _LANE)
        if idx == n - 1:
            # Final Linear(prev, 1): f32 row vector for VPU multiply + reduce.
            w_p = jnp.zeros((1, in_p), jnp.float32).at[:, :fan_in].set(w.T)
            b_p = b.reshape(1, 1).astype(jnp.float32)
        else:
            out_p = _round_up(fan_out, _LANE)
            w_p = (jnp.zeros((in_p, out_p), jnp.float32)
                   .at[:fan_in, :fan_out].set(w)
                   .astype(jnp.bfloat16))              # zero padding exact in bf16
            b_p = jnp.zeros((1, out_p), jnp.float32).at[:, :fan_out].set(b)
        padded_params.append((w_p, b_p))
    return params, padded_params, layer_dims


# ----------------------------------------------------------------------------
# Pure-JAX f32 reference for correctness check
# ----------------------------------------------------------------------------
def bpnn_reference(x, params, *, activation_func: int):
    h = x
    n = len(params)
    for i, (w, b) in enumerate(params):
        h = h @ w + b
        if i < n - 1:
            h = _activation(h, activation_func)
    return h


if __name__ == "__main__":
    key = jax.random.PRNGKey(0)

    batch = 8
    input_dim = 16
    hidden_layers = 2
    hidden_units_range = (32, 64)
    dropout_rate = 0.1    # identity at inference

    kx, kp = jax.random.split(key)
    x = jax.random.normal(kx, (batch, input_dim), jnp.float32)
    params, padded_params, layer_dims = build_bpnn_params(
        kp, input_dim, hidden_layers, hidden_units_range
    )

    # Small-batch check, ReLU (single grid tile).
    out = bpnn_forward(x, padded_params, activation_func=0)
    out = jax.block_until_ready(out)
    ref = bpnn_reference(x, params, activation_func=0)
    assert out.shape == (batch, 1), out.shape
    # bf16 matmul inputs -> loosened tolerance vs f32 reference.
    assert jnp.allclose(out, ref, atol=5e-2, rtol=5e-2), (out, ref)

    # Sigmoid check: exercises the zero-padded-lane scheme with an activation
    # whose value at 0 is nonzero (padded columns must still be inert).
    out_s = jax.block_until_ready(bpnn_forward(x, padded_params, activation_func=2))
    ref_s = bpnn_reference(x, params, activation_func=2)
    assert jnp.allclose(out_s, ref_s, atol=5e-2, rtol=5e-2), (out_s, ref_s)

    # Larger batch: exercises batch padding + multi-tile parallel grid
    # (B=300 -> 2 tiles of 160 rows, 20 padded tail rows).
    kx2, _ = jax.random.split(kx)
    batch2 = 300
    x2 = jax.random.normal(kx2, (batch2, input_dim), jnp.float32)
    out2 = jax.block_until_ready(
        bpnn_forward(x2, padded_params, activation_func=0)
    )
    ref2 = bpnn_reference(x2, params, activation_func=0)
    assert out2.shape == (batch2, 1), out2.shape
    assert jnp.allclose(out2, ref2, atol=5e-2, rtol=5e-2)

    print("KERNEL_OK")
</pallas_src>

<mosaic_0001>
module attributes {stable_mosaic.version = 11 : i64} {
  func.func @_bpnn_kernel(%arg0: i32, %arg1: memref<16x16xbf16, #tpu.memory_space<vmem>>, %arg2: memref<16x128xbf16, #tpu.memory_space<vmem>>, %arg3: memref<1x128xf32, #tpu.memory_space<vmem>>, %arg4: memref<128x128xbf16, #tpu.memory_space<vmem>>, %arg5: memref<1x128xf32, #tpu.memory_space<vmem>>, %arg6: memref<1x128xf32, #tpu.memory_space<vmem>>, %arg7: memref<1x1xf32, #tpu.memory_space<vmem>>, %arg8: memref<16x1xf32, #tpu.memory_space<vmem>>) attributes {dimension_semantics = [#tpu.dimension_semantics<parallel>], iteration_bounds = array<i64: 1>, scalar_prefetch = 0 : i64, scratch_operands = 0 : i64, tpu.core_type = #tpu.core_type<tc>, window_params = [{transform_indices = @transform_0, window_bounds = array<i64: 16, 16>}, {pipeline_mode = #tpu.pipeline_mode<synchronous>, transform_indices = @transform_1, window_bounds = array<i64: 16, 128>}, {pipeline_mode = #tpu.pipeline_mode<synchronous>, transform_indices = @transform_2, window_bounds = array<i64: 1, 128>}, {pipeline_mode = #tpu.pipeline_mode<synchronous>, transform_indices = @transform_3, window_bounds = array<i64: 128, 128>}, {pipeline_mode = #tpu.pipeline_mode<synchronous>, transform_indices = @transform_4, window_bounds = array<i64: 1, 128>}, {pipeline_mode = #tpu.pipeline_mode<synchronous>, transform_indices = @transform_5, window_bounds = array<i64: 1, 128>}, {pipeline_mode = #tpu.pipeline_mode<synchronous>, transform_indices = @transform_6, window_bounds = array<i64: 1, 1>}, {transform_indices = @transform_7, window_bounds = array<i64: 16, 1>}]} {
    %c0 = arith.constant 0 : index
    %c0_0 = arith.constant 0 : index
    %0 = vector.load %arg1[%c0, %c0_0] : memref<16x16xbf16, #tpu.memory_space<vmem>>, vector<16x16xbf16>
    %c0_1 = arith.constant 0 : index
    %c0_2 = arith.constant 0 : index
    %1 = vector.load %arg2[%c0_1, %c0_2] : memref<16x128xbf16, #tpu.memory_space<vmem>>, vector<16x128xbf16>
    %c0_3 = arith.constant 0 : index
    %c0_4 = arith.constant 0 : index
    %2 = vector.load %arg3[%c0_3, %c0_4] : memref<1x128xf32, #tpu.memory_space<vmem>>, vector<1x128xf32>
    %cst = arith.constant dense<0.000000e+00> : vector<16x128xf32>
    %3 = tpu.matmul %0, %1, %cst {dimension_numbers = #tpu.dot_dimension_numbers<[1], [0], [0], [1], [0, 0, 1, 1], [], []>} : vector<16x16xbf16>, vector<16x128xbf16>, vector<16x128xf32> -> vector<16x128xf32>
    %4 = vector.broadcast %2 : vector<1x128xf32> to vector<16x128xf32>
    %5 = arith.addf %3, %4 : vector<16x128xf32>
    %cst_5 = arith.constant 0.000000e+00 : f32
    %6 = vector.broadcast %cst_5 : f32 to vector<16x128xf32>
    %7 = arith.maximumf %5, %6 : vector<16x128xf32>
    %c0_6 = arith.constant 0 : index
    %c0_7 = arith.constant 0 : index
    %8 = vector.load %arg4[%c0_6, %c0_7] : memref<128x128xbf16, #tpu.memory_space<vmem>>, vector<128x128xbf16>
    %c0_8 = arith.constant 0 : index
    %c0_9 = arith.constant 0 : index
    %9 = vector.load %arg5[%c0_8, %c0_9] : memref<1x128xf32, #tpu.memory_space<vmem>>, vector<1x128xf32>
    %10 = arith.truncf %7 : vector<16x128xf32> to vector<16x128xbf16>
    %cst_10 = arith.constant dense<0.000000e+00> : vector<16x128xf32>
    %11 = tpu.matmul %10, %8, %cst_10 {dimension_numbers = #tpu.dot_dimension_numbers<[1], [0], [0], [1], [0, 0, 1, 1], [], []>} : vector<16x128xbf16>, vector<128x128xbf16>, vector<16x128xf32> -> vector<16x128xf32>
    %12 = vector.broadcast %9 : vector<1x128xf32> to vector<16x128xf32>
    %13 = arith.addf %11, %12 : vector<16x128xf32>
    %cst_11 = arith.constant 0.000000e+00 : f32
    %14 = vector.broadcast %cst_11 : f32 to vector<16x128xf32>
    %15 = arith.maximumf %13, %14 : vector<16x128xf32>
    %c0_12 = arith.constant 0 : index
    %c0_13 = arith.constant 0 : index
    %16 = vector.load %arg6[%c0_12, %c0_13] : memref<1x128xf32, #tpu.memory_space<vmem>>, vector<1x128xf32>
    %c0_14 = arith.constant 0 : index
    %c0_15 = arith.constant 0 : index
    %17 = vector.load %arg7[%c0_14, %c0_15] : memref<1x1xf32, #tpu.memory_space<vmem>>, vector<1x1xf32>
    %18 = vector.broadcast %16 : vector<1x128xf32> to vector<16x128xf32>
    %19 = arith.mulf %15, %18 : vector<16x128xf32>
    %cst_16 = arith.constant dense<0.000000e+00> : vector<16xf32>
    %20 = vector.multi_reduction <add>, %19, %cst_16 [1] : vector<16x128xf32> to vector<16xf32>
    %21 = vector.shape_cast %20 : vector<16xf32> to vector<16x1xf32>
    %22 = vector.broadcast %17 : vector<1x1xf32> to vector<16x1xf32>
    %23 = arith.addf %21, %22 : vector<16x1xf32>
    %c0_17 = arith.constant 0 : index
    %c0_18 = arith.constant 0 : index
    %24 = vector.load %arg8[%c0_17, %c0_18] : memref<16x1xf32, #tpu.memory_space<vmem>>, vector<16x1xf32>
    tpu.vector_store %arg8[%c0_17, %c0_18], %23 {strides = array<i32>} : memref<16x1xf32, #tpu.memory_space<vmem>>, vector<16x1xf32>,
    return
  }
  func.func @transform_0(%arg0: i32) -> (i32, i32) {
    %c0_i32 = arith.constant 0 : i32
    %c0_i32_0 = arith.constant 0 : i32
    return %arg0, %c0_i32 : i32, i32
  }
  func.func @transform_1(%arg0: i32) -> (i32, i32) {
    %c0_i32 = arith.constant 0 : i32
    %c0_i32_0 = arith.constant 0 : i32
    %c0_i32_1 = arith.constant 0 : i32
    return %c0_i32, %c0_i32_0 : i32, i32
  }
  func.func @transform_2(%arg0: i32) -> (i32, i32) {
    %c0_i32 = arith.constant 0 : i32
    %c0_i32_0 = arith.constant 0 : i32
    %c0_i32_1 = arith.constant 0 : i32
    return %c0_i32, %c0_i32_0 : i32, i32
  }
  func.func @transform_3(%arg0: i32) -> (i32, i32) {
    %c0_i32 = arith.constant 0 : i32
    %c0_i32_0 = arith.constant 0 : i32
    %c0_i32_1 = arith.constant 0 : i32
    return %c0_i32, %c0_i32_0 : i32, i32
  }
  func.func @transform_4(%arg0: i32) -> (i32, i32) {
    %c0_i32 = arith.constant 0 : i32
    %c0_i32_0 = arith.constant 0 : i32
    %c0_i32_1 = arith.constant 0 : i32
    return %c0_i32, %c0_i32_0 : i32, i32
  }
  func.func @transform_5(%arg0: i32) -> (i32, i32) {
    %c0_i32 = arith.constant 0 : i32
    %c0_i32_0 = arith.constant 0 : i32
    %c0_i32_1 = arith.constant 0 : i32
    return %c0_i32, %c0_i32_0 : i32, i32
  }
  func.func @transform_6(%arg0: i32) -> (i32, i32) {
    %c0_i32 = arith.constant 0 : i32
    %c0_i32_0 = arith.constant 0 : i32
    %c0_i32_1 = arith.constant 0 : i32
    return %c0_i32, %c0_i32_0 : i32, i32
  }
  func.func @transform_7(%arg0: i32) -> (i32, i32) {
    %c0_i32 = arith.constant 0 : i32
    %c0_i32_0 = arith.constant 0 : i32
    return %arg0, %c0_i32 : i32, i32
  }
}

</mosaic_0001>

<bundles_post_ra>
// kernel: tpu_custom_call.1
= control target key start
LH: loop header
LB: loop body
LE: loop exit
PB: predicated region body
PF: predicated region fallthrough
CT: control target
= control target key end

     0   :  { %s541_s0 = inlined_call_operand.hbm [shape: bf16[16,16], index: 0, kind: input, shape index: {}]   ;;  %s542_s1 = inlined_call_operand.hbm [shape: bf16[16,128], index: 1, kind: input, shape index: {}]   ;;  %s543_s2 = inlined_call_operand.vmem [shape: f32[1,128], index: 2, kind: input, shape index: {}]   ;;  %s544_s3 = inlined_call_operand.hbm [shape: bf16[128,128], index: 3, kind: input, shape index: {}]   ;;  %s545_s4 = inlined_call_operand.vmem [shape: f32[1,128], index: 4, kind: input, shape index: {}]   ;;  %s546_s5 = inlined_call_operand.vmem [shape: f32[1,128], index: 5, kind: input, shape index: {}]   ;;  %s547_s6 = inlined_call_operand.<no memory space> [shape: f32[1,1], index: 6, kind: input, shape index: {}]   ;;  %s548_s7 = inlined_call_operand.vmem [shape: f32[16,1], index: 7, kind: output, shape index: {}]  }
   0x1   :  { %v12_v0 = vstv %s547_s6 }
   0x2   :  { %13 = vst [vmem:[#allocation2] sm:$0x1] %v12_v0 }
   0x3   :  { %14 = vsyncpa [#allocation4], 0 }
   0x4   :  { %15 = vsyncpa [#allocation6], 0  ;;  %s424_s26 = smov [#allocation5]   ;;  %s425_s28 = smov [#allocation3]  }
   0x5   :  { %s33_s27 = sshll.u32 %s424_s26, 4  ;;  %s21_s29 = sshll.u32 %s425_s28, 4  ;;  %s34_s27 = int_to_ptr.vmem [resolvable:$true] %s33_s27  ;;  %s474_s29 = int_to_ptr.vmem [resolvable:$true] %s21_s29 }
   0x6   :  { %s354_s9 = scalar_lea.hbm %s542_s1, 128 }
   0x7   :  { %p355_p0 = scmp.ne.s32.totalorder %s542_s1, %s354_s9  ;;  %p358_p1 = scmp.lt.u32.totalorder %s354_s9, %s542_s1 }
   0x9   :  { %p360_p2 = pnand %p358_p1, %p355_p0 }
   0xb   :  { %363 = shalt.err (!%p360_p2)
}
   0xc   :  { %s364_s13 = scalar_lea.vmem %s34_s27, 128  ;;  %p369_p4 = scmp.lt.s32.totalorder %s34_s27, %s34_s27 }
   0xd   :  { %p365_p3 = scmp.ne.s32.totalorder %s34_s27, %s364_s13  ;;  %p370_p5 = scmp.lt.s32.totalorder %s364_s13, %s364_s13 }
   0xf   :  { %p371_p6 = por %p370_p5, %p369_p4 }
  0x11   :  { %p372_p7 = pnand %p371_p6, %p365_p3 }
  0x13   :  { %375 = shalt.err (!%p372_p7)
}
  0x14   :  { %s426_s14 = smov 64   ;;  %s427_s15 = smov 4  }
  0x15   :  { %39 = dma.hbm_to_vmem [thread:$0]  %s542_s1, 128, %s34_s27, [#allocation6], %s426_s14, %s426_s14, %s427_s15  }
  0x16   :  { %s376_s20 = scalar_lea.hbm %s541_s0, 128 }
  0x17   :  { %p377_p8 = scmp.ne.s32.totalorder %s541_s0, %s376_s20  ;;  %p380_p9 = scmp.lt.u32.totalorder %s376_s20, %s541_s0 }
  0x19   :  { %p382_p10 = pnand %p380_p9, %p377_p8 }
  0x1b   :  { %385 = shalt.err (!%p382_p10)
}
  0x1c   :  { %s386_s25 = scalar_lea.vmem %s474_s29, 128  ;;  %p391_p12 = scmp.lt.s32.totalorder %s474_s29, %s474_s29 }
  0x1d   :  { %p387_p11 = scmp.ne.s32.totalorder %s474_s29, %s386_s25  ;;  %p392_p13 = scmp.lt.s32.totalorder %s386_s25, %s386_s25 }
  0x1f   :  { %p393_p0 = por %p392_p13, %p391_p12 }
  0x21   :  { %p394_p1 = pnand %p393_p0, %p387_p11 }
  0x23   :  { %397 = shalt.err (!%p394_p1)
}
  0x24   :  { %27 = dma.hbm_to_vmem [thread:$0]  %s541_s0, 128, %s474_s29, [#allocation4], %s426_s14, %s426_s14, %s427_s15  }
  0x25   :  { %s428_s27 = smov [#allocation7]   ;;  %s398_s9 = scalar_lea.hbm %s544_s3, 1024 }
  0x26   :  { %s47_s28 = sshll.u32 %s428_s27, 4  ;;  %p399_p2 = scmp.ne.s32.totalorder %s544_s3, %s398_s9  ;;  %s48_s28 = int_to_ptr.vmem [resolvable:$true] %s47_s28 }
  0x27   :  { %p402_p3 = scmp.lt.u32.totalorder %s398_s9, %s544_s3 }
  0x29   :  { %p404_p4 = pnand %p402_p3, %p399_p2 }
  0x2b   :  { %407 = shalt.err (!%p404_p4)
}
  0x2c   :  { %s408_s13 = scalar_lea.vmem %s48_s28, 1024  ;;  %p413_p6 = scmp.lt.s32.totalorder %s48_s28, %s48_s28 }
  0x2d   :  { %p409_p5 = scmp.ne.s32.totalorder %s48_s28, %s408_s13  ;;  %p414_p7 = scmp.lt.s32.totalorder %s408_s13, %s408_s13 }
  0x2f   :  { %p415_p8 = por %p414_p7, %p413_p6 }
  0x31   :  { %p416_p9 = pnand %p415_p8, %p409_p5 }
  0x33   :  { %419 = shalt.err (!%p416_p9)
}
  0x34   :  { %53 = dma.hbm_to_vmem [thread:$0]  %s544_s3, 1024, %s48_s28, [#allocation6], %s426_s14, %s426_s14, %s427_s15  }
  0x35   :  { %420 = dma.done.wait [#allocation4], 128  }
  0x36   :  { %421 = vsyncadd [#allocation4], 4294967168 }
  0x37   :  { %422 = dma.done.wait [#allocation6], 1152  }
  0x38   :  { %423 = vsyncadd [#allocation6], 4294966144  ;;  %v429_v1 = vmov 0.0   ;;  %vm430_vm0 = vmmov 0   ;;  %v344_v2 = vld [vmem:[#allocation5] sm:$0xff]   ;;  %v345_v3 = vld [vmem:[#allocation3] sm:$0xff]  }
  0x39   :  { %311 = vmatprep.subr.bf16.mxu0 %v429_v1  ;;  %313 = vmatprep.mubr.msk.bf16.mxu0 %vm430_vm0, %v429_v1  ;;  %vm92_vm1 = vcmask 130048   ;;  %v346_v4 = vld [vmem:[#allocation7] sm:$0xff]   ;;  %v347_v5 = vld [vmem:[#allocation7 + $0x8] sm:$0xff]   ;;  %v348_v6 = vld [vmem:[#allocation7 + $0x10] sm:$0xff]   ;;  %vm276_vm2 = vcmask 7168  }
  0x3a   :  { %317 = vmatprep.subr.bf16.mxu1 %v429_v1  ;;  %333 = vmatprep.mubr.msk.bf16.mxu1 %vm430_vm0, %v429_v1  ;;  %v349_v7 = vld [vmem:[#allocation7 + $0x18] sm:$0xff]   ;;  %v350_v8 = vld [vmem:[#allocation7 + $0x20] sm:$0xff]   ;;  %v351_v9 = vld [vmem:[#allocation7 + $0x28] sm:$0xff]  }
  0x3b   :  { %312 = vmatpush3.bf16.msra.mxu0 %v344_v2  ;;  %318 = vmatpush3.bf16.msra.mxu1 %v346_v4  ;;  %v352_v10 = vld [vmem:[#allocation7 + $0x30] sm:$0xff]   ;;  %v353_v11 = vld [vmem:[#allocation7 + $0x38] sm:$0xff]   ;;  %v285_v12 = vld [vmem:[%s543_s2] ss:$0 sm:$0xff] }
  0x3c   :  { %319 = vmatprep.subr.bf16.mxu1 %v429_v1  ;;  %v289_v22 = vld [vmem:[%s545_s4] ss:$0 sm:$0xff] }
  0x3d   :  { %v298_v27 = vld [vmem:[%s546_s5] ss:$0 sm:$0xff] }
  0x3e   :  { %314 = vmatmul.mubr.msk.bf16.vlgmr.msra.gmra.mrb[0].mxu0 %vm92_vm1, %v345_v3  ;;  %v299_v34 = vld [vmem:[#allocation2] ss:$0 sm:$0xff] }
  0x3f   :  { %320 = vmatpush3.bf16.msra.mxu1 %v347_v5 }
  0x40   :  { %321 = vmatprep.subr.bf16.mxu1 %v429_v1 }
  0x43   :  { %322 = vmatpush3.bf16.msra.mxu1 %v348_v6 }
  0x44   :  { %323 = vmatprep.subr.bf16.mxu1 %v429_v1 }
  0x47   :  { %324 = vmatpush3.bf16.msra.mxu1 %v349_v7 }
  0x48   :  { %325 = vmatprep.subr.bf16.mxu1 %v429_v1 }
  0x4b   :  { %326 = vmatpush3.bf16.msra.mxu1 %v350_v8 }
  0x4c   :  { %327 = vmatprep.subr.bf16.mxu1 %v429_v1 }
  0x4f   :  { %328 = vmatpush3.bf16.msra.mxu1 %v351_v9 }
  0x50   :  { %329 = vmatprep.subr.bf16.mxu1 %v429_v1 }
  0x53   :  { %330 = vmatpush3.bf16.msra.mxu1 %v352_v10 }
  0x54   :  { %331 = vmatprep.subr.bf16.mxu1 %v429_v1 }
  0x57   :  { %332 = vmatpush3.bf16.msra.mxu1 %v353_v11 }
 0x111   :  { %v130_v13 = vpop.f32.mrb[0].mxu0 }
 0x112   :  { %v131_v14 = vadd.f32 %v285_v12, %v130_v13  ;;  %v315_v15 = vpop.f32.mrb[1].mxu0 }
 0x113   :  { %v133_v16 = vpop.f32.mrb[2].mxu0 }
 0x114   :  { %v134_v17 = vadd.f32 %v285_v12, %v133_v16  ;;  %v316_v18 = vpop.f32.mrb[3].mxu0  ;;  %v137_v19 = vmax.f32 %v131_v14, 0.0 }
 0x116   :  { %v138_v20 = vmax.f32 %v134_v17, 0.0 }
 0x118   :  { %v156_v21 = vpack.c.bf16 %v138_v20, %v137_v19 }
 0x11a   :  { %334 = vmatmul.mubr.bf16.vlgmr.msra.gmra.mrb[0].mxu1 %v156_v21 }
 0x1ed   :  { %v245_v23 = vpop.f32.mrb[0].mxu1 }
 0x1ee   :  { %v246_v24 = vadd.f32 %v289_v22, %v245_v23  ;;  %v335_v25 = vpop.f32.mrb[1].mxu1 }
 0x1ef   :  { %v248_v26 = vpop.f32.mrb[2].mxu1 }
 0x1f0   :  { %v252_v28 = vmax.f32 %v246_v24, 0.0  ;;  %v249_v29 = vadd.f32 %v289_v22, %v248_v26  ;;  %v336_v30 = vpop.f32.mrb[3].mxu1 }
 0x1f2   :  { %v253_v31 = vmax.f32 %v249_v29, 0.0  ;;  %v262_v32 = vmul.f32 %v298_v27, %v252_v28 }
 0x1f4   :  { %264 = vadd.xlane.f32.xlu0 %v262_v32  ;;  %v263_v33 = vmul.f32 %v298_v27, %v253_v31 }
 0x1f8   :  { %266 = vadd.xlane.f32.xlu0 %v263_v33 }
 0x281   :  { %v265_v35 = vpop.xlane.xlu0 %264 }
 0x282   :  { %v274_v36 = vadd.f32 %v299_v34, %v265_v35 }
 0x284   :  { %277 = vst.msk [vmem:[%s548_s7] sm:$0xff] %vm276_vm2, %v274_v36 }
 0x285   :  { %v267_v37 = vpop.xlane.xlu0 %266 }
 0x286   :  { %v275_v38 = vadd.f32 %v299_v34, %v267_v37 }
 0x288   :  { %278 = vst.msk [vmem:[%s548_s7 + $0x8] sm:$0xff] %vm276_vm2, %v275_v38 }
 0x289   :  { %283 = vsyncpa [#allocation4], 1 }
 0x28a   :  { %284 = vsyncpa [#allocation6], 1 }

</bundles_post_ra>
